<compile_context>
chip_gen: v7x
topology: tpu7x:2x2x1
jax: 0.10.0
libtpu: 0.0.40
codegen_flags: <defaults>
</compile_context>

<pallas_src>
import functools

import jax
import jax.numpy as jnp
import numpy as np
from jax.experimental import pallas as pl
from jax.experimental.pallas import tpu as pltpu

_ROW0 = 8  # sublane-aligned row offset of the image inside the padded scratch


def zero_conv2d_kernel(x_ref, w_ref, bs_ref, o_ref, pad_ref):
    # x_ref:   (N, H, W*Cin)           image rows, (W, Cin) flattened onto lanes
    # w_ref:   (3, (W+2)*Cin, W*Cout)  block-Toeplitz weights, one slab per dy
    # bs_ref:  (2, W*Cout)             row 0 = tiled bias, row 1 = tiled scale
    # o_ref:   (N*H, W*Cout)           lane-dense output
    # pad_ref: (N, SPAD, (W+2)*Cin)    VMEM scratch holding value-1 padded rows
    N, H, WCIN = x_ref.shape
    KH, KROW, WCOUT = w_ref.shape
    NH = N * H

    # ---- in-kernel value=1 padding (aligned stores only) --------------------
    pad_ref[...] = jnp.ones(pad_ref.shape, dtype=pad_ref.dtype)
    pad_ref[:, _ROW0:_ROW0 + H, 0:WCIN] = x_ref[...].astype(pad_ref.dtype)
    padded = pad_ref[...]                                    # (N, SPAD, KROW)

    # ---- 3 fused row-slab matmuls on the MXU --------------------------------
    # output row h needs padded rows h-1, h, h+1 -> scratch rows _ROW0-1+dy+h
    acc = None
    for dy in range(KH):                                     # KH = 3, unrolled
        slab = padded[:, _ROW0 - 1 + dy:_ROW0 - 1 + dy + H, :].reshape(NH, KROW)
        part = jnp.dot(slab, w_ref[dy], preferred_element_type=jnp.float32)
        acc = part if acc is None else acc + part

    # ---- epilogue: (conv + bias) * exp(3 * scale), all f32 -------------------
    bias = bs_ref[0:1, :]                                    # (1, W*Cout)
    gain = jnp.exp(bs_ref[1:2, :] * 3.0)                     # (1, W*Cout), EUP
    o_ref[...] = ((acc + bias) * gain).astype(o_ref.dtype)


def _toeplitz_weights(w_oihw, W):
    """Expand (Cout, Cin, 3, 3) conv weights into 3 banded matrices of shape
    ((W+2)*Cin, W*Cout) acting on the kernel's value-1 padded rows (image at
    columns [0, W*Cin), pad ones at [W*Cin, (W+2)*Cin); the left-pad column
    index wraps modulo (W+2)*Cin, which is safe since both pad regions hold
    the constant 1)."""
    Cout, Cin, KH, KW = w_oihw.shape
    KROW, WCOUT = (W + 2) * Cin, W * Cout

    dy, dx, ci, w, co = np.meshgrid(np.arange(KH), np.arange(KW), np.arange(Cin),
                                    np.arange(W), np.arange(Cout), indexing="ij")
    rows = ((w + dx - 1) * Cin + ci) % KROW     # circular: w=0,dx=0 -> ones cols
    cols = w * Cout + co

    w_hwio = jnp.transpose(w_oihw, (2, 3, 1, 0))             # (KH, KW, Cin, Cout)
    vals = jnp.broadcast_to(w_hwio[:, :, :, None, :],
                            (KH, KW, Cin, W, Cout)).reshape(-1)
    wmat = jnp.zeros((KH, KROW, WCOUT), w_oihw.dtype)
    return wmat.at[dy.ravel(), rows.ravel(), cols.ravel()].add(vals)


@functools.partial(jax.jit)
def zero_conv2d(x_nchw, w_oihw, bias, scale):
    """ZeroConv2d forward. x_nchw: (N, Cin, H, W); w_oihw: (Cout, Cin, 3, 3);
    bias: (Cout,); scale: (1, Cout, 1, 1).  Returns (N, Cout, H, W)."""
    N, Cin, H, W = x_nchw.shape
    Cout = w_oihw.shape[0]
    KROW, WCOUT = (W + 2) * Cin, W * Cout
    SPAD = _ROW0 + H + _ROW0                    # padded scratch rows (mult of 8)

    # Layout glue (metadata-only reshape): NCHW -> NHWC -> (N, H, W*Cin)
    x_rows = jnp.transpose(x_nchw, (0, 2, 3, 1)).reshape(N, H, W * Cin)
    wmat = _toeplitz_weights(w_oihw, W)                        # (3, KROW, WCOUT)
    bs = jnp.stack([jnp.tile(bias, W),
                    jnp.tile(jnp.reshape(scale, (Cout,)), W)])  # (2, WCOUT)

    out2 = pl.pallas_call(
        zero_conv2d_kernel,
        out_shape=jax.ShapeDtypeStruct((N * H, WCOUT), x_nchw.dtype),
        grid=(1,),                               # whole batch in one step
        in_specs=[
            pl.BlockSpec((N, H, W * Cin), lambda i: (0, 0, 0)),
            pl.BlockSpec((3, KROW, WCOUT), lambda i: (0, 0, 0)),
            pl.BlockSpec((2, WCOUT), lambda i: (0, 0)),
        ],
        out_specs=pl.BlockSpec((N * H, WCOUT), lambda i: (0, 0)),
        scratch_shapes=[pltpu.VMEM((N, SPAD, KROW), jnp.float32)],
        compiler_params=pltpu.CompilerParams(dimension_semantics=("arbitrary",)),
    )(x_rows, wmat, bs)

    # (N*H, W*Cout) -> (N, H, W, Cout) -> NCHW
    return jnp.transpose(out2.reshape(N, H, W, Cout), (0, 3, 1, 2))


def zero_conv2d_reference(x_nchw, w_oihw, bias, scale):
    """Pure-JAX reference replicating the PyTorch forward exactly."""
    xpad = jnp.pad(x_nchw, ((0, 0), (0, 0), (1, 1), (1, 1)), constant_values=1.0)
    out = jax.lax.conv_general_dilated(
        xpad, w_oihw, window_strides=(1, 1), padding="VALID",
        dimension_numbers=("NCHW", "OIHW", "NCHW"))
    out = out + bias[None, :, None, None]
    return out * jnp.exp(scale * 3.0)


if __name__ == "__main__":
    N, Cin, Cout, H, W = 2, 4, 8, 16, 16

    key = jax.random.PRNGKey(0)
    kx, kw, kb, ks = jax.random.split(key, 4)

    x = jax.random.normal(kx, (N, Cin, H, W), dtype=jnp.float32)
    # Module zero-inits these; use deterministic non-zero values to exercise
    # the kernel's compute path.
    w = 0.05 * jax.random.normal(kw, (Cout, Cin, 3, 3), dtype=jnp.float32)
    b = 0.05 * jax.random.normal(kb, (Cout,), dtype=jnp.float32)
    scale = 0.05 * jax.random.normal(ks, (1, Cout, 1, 1), dtype=jnp.float32)

    out = jax.block_until_ready(zero_conv2d(x, w, b, scale))
    ref = jax.block_until_ready(zero_conv2d_reference(x, w, b, scale))

    assert out.shape == (N, Cout, H, W), out.shape
    max_err = float(jnp.max(jnp.abs(out - ref)))
    assert jnp.allclose(out, ref, atol=1e-5, rtol=1e-5), max_err
    print("KERNEL_OK")
</pallas_src>

<mosaic_0001>
module attributes {stable_mosaic.version = 11 : i64} {
  func.func private @main(%arg0: i32) attributes {dimension_semantics = [#tpu.dimension_semantics<core_parallel>], iteration_bounds = array<i64: 2>, tpu.core_type = #tpu.core_type<sc_scalar_subcore>, window_params = []} {
    return
  }
}

module attributes {stable_mosaic.version = 11 : i64} {
  func.func private @main(%arg0: i32) attributes {dimension_semantics = [#tpu.dimension_semantics<core_parallel>], iteration_bounds = array<i64: 2>, tpu.core_type = #tpu.core_type<sc_scalar_subcore>, window_params = []} {
    return
  }
}

module attributes {stable_mosaic.version = 11 : i64} {
  func.func @zero_conv2d_kernel(%arg0: i32, %arg1: memref<2x16x64xf32, #tpu.memory_space<vmem>>, %arg2: memref<3x72x128xf32, #tpu.memory_space<vmem>>, %arg3: memref<2x128xf32, #tpu.memory_space<vmem>>, %arg4: memref<32x128xf32, #tpu.memory_space<vmem>>, %arg5: memref<2x32x72xf32, #tpu.memory_space<vmem>>) attributes {dimension_semantics = [#tpu.dimension_semantics<arbitrary>], iteration_bounds = array<i64: 1>, scalar_prefetch = 0 : i64, scratch_operands = 1 : i64, tpu.core_type = #tpu.core_type<tc>, window_params = [{pipeline_mode = #tpu.pipeline_mode<synchronous>, transform_indices = @transform_0, window_bounds = array<i64: 2, 16, 64>}, {pipeline_mode = #tpu.pipeline_mode<synchronous>, transform_indices = @transform_1, window_bounds = array<i64: 3, 72, 128>}, {pipeline_mode = #tpu.pipeline_mode<synchronous>, transform_indices = @transform_2, window_bounds = array<i64: 2, 128>}, {pipeline_mode = #tpu.pipeline_mode<synchronous>, transform_indices = @transform_3, window_bounds = array<i64: 32, 128>}]} {
    %cst = arith.constant 1.000000e+00 : f32
    %0 = vector.broadcast %cst : f32 to vector<2x32x72xf32>
    %c0 = arith.constant 0 : index
    %c0_0 = arith.constant 0 : index
    %c0_1 = arith.constant 0 : index
    %1 = vector.load %arg5[%c0, %c0_0, %c0_1] : memref<2x32x72xf32, #tpu.memory_space<vmem>>, vector<2x32x72xf32>
    tpu.vector_store %arg5[%c0, %c0_0, %c0_1], %0 {strides = array<i32>} : memref<2x32x72xf32, #tpu.memory_space<vmem>>, vector<2x32x72xf32>,
    %c0_2 = arith.constant 0 : index
    %c0_3 = arith.constant 0 : index
    %c0_4 = arith.constant 0 : index
    %2 = vector.load %arg1[%c0_2, %c0_3, %c0_4] : memref<2x16x64xf32, #tpu.memory_space<vmem>>, vector<2x16x64xf32>
    %c0_5 = arith.constant 0 : index
    %c8 = arith.constant 8 : index
    %c0_6 = arith.constant 0 : index
    %3 = vector.load %arg5[%c0_5, %c8, %c0_6] : memref<2x32x72xf32, #tpu.memory_space<vmem>>, vector<2x16x64xf32>
    tpu.vector_store %arg5[%c0_5, %c8, %c0_6], %2 {strides = array<i32>} : memref<2x32x72xf32, #tpu.memory_space<vmem>>, vector<2x16x64xf32>,
    %c0_7 = arith.constant 0 : index
    %c0_8 = arith.constant 0 : index
    %c0_9 = arith.constant 0 : index
    %4 = vector.load %arg5[%c0_7, %c0_8, %c0_9] : memref<2x32x72xf32, #tpu.memory_space<vmem>>, vector<2x32x72xf32>
    %5 = vector.extract_strided_slice %4 {offsets = [0, 7, 0], sizes = [2, 16, 72], strides = [1, 1, 1]} : vector<2x32x72xf32> to vector<2x16x72xf32>
    %6 = vector.shape_cast %5 : vector<2x16x72xf32> to vector<32x72xf32>
    %c0_10 = arith.constant 0 : index
    %c0_11 = arith.constant 0 : index
    %c0_12 = arith.constant 0 : index
    %7 = vector.load %arg2[%c0_10, %c0_11, %c0_12] : memref<3x72x128xf32, #tpu.memory_space<vmem>>, vector<1x72x128xf32>
    %8 = vector.shape_cast %7 : vector<1x72x128xf32> to vector<72x128xf32>
    %cst_13 = arith.constant dense<0.000000e+00> : vector<32x128xf32>
    %9 = tpu.matmul %6, %8, %cst_13 {dimension_numbers = #tpu.dot_dimension_numbers<[1], [0], [0], [1], [0, 0, 1, 1], [], []>} : vector<32x72xf32>, vector<72x128xf32>, vector<32x128xf32> -> vector<32x128xf32>
    %10 = vector.extract_strided_slice %4 {offsets = [0, 8, 0], sizes = [2, 16, 72], strides = [1, 1, 1]} : vector<2x32x72xf32> to vector<2x16x72xf32>
    %11 = vector.shape_cast %10 : vector<2x16x72xf32> to vector<32x72xf32>
    %c1 = arith.constant 1 : index
    %c0_14 = arith.constant 0 : index
    %c0_15 = arith.constant 0 : index
    %12 = vector.load %arg2[%c1, %c0_14, %c0_15] : memref<3x72x128xf32, #tpu.memory_space<vmem>>, vector<1x72x128xf32>
    %13 = vector.shape_cast %12 : vector<1x72x128xf32> to vector<72x128xf32>
    %cst_16 = arith.constant dense<0.000000e+00> : vector<32x128xf32>
    %14 = tpu.matmul %11, %13, %cst_16 {dimension_numbers = #tpu.dot_dimension_numbers<[1], [0], [0], [1], [0, 0, 1, 1], [], []>} : vector<32x72xf32>, vector<72x128xf32>, vector<32x128xf32> -> vector<32x128xf32>
    %15 = arith.addf %9, %14 : vector<32x128xf32>
    %16 = vector.extract_strided_slice %4 {offsets = [0, 9, 0], sizes = [2, 16, 72], strides = [1, 1, 1]} : vector<2x32x72xf32> to vector<2x16x72xf32>
    %17 = vector.shape_cast %16 : vector<2x16x72xf32> to vector<32x72xf32>
    %c2 = arith.constant 2 : index
    %c0_17 = arith.constant 0 : index
    %c0_18 = arith.constant 0 : index
    %18 = vector.load %arg2[%c2, %c0_17, %c0_18] : memref<3x72x128xf32, #tpu.memory_space<vmem>>, vector<1x72x128xf32>
    %19 = vector.shape_cast %18 : vector<1x72x128xf32> to vector<72x128xf32>
    %cst_19 = arith.constant dense<0.000000e+00> : vector<32x128xf32>
    %20 = tpu.matmul %17, %19, %cst_19 {dimension_numbers = #tpu.dot_dimension_numbers<[1], [0], [0], [1], [0, 0, 1, 1], [], []>} : vector<32x72xf32>, vector<72x128xf32>, vector<32x128xf32> -> vector<32x128xf32>
    %21 = arith.addf %15, %20 : vector<32x128xf32>
    %c0_20 = arith.constant 0 : index
    %c0_21 = arith.constant 0 : index
    %22 = vector.load %arg3[%c0_20, %c0_21] : memref<2x128xf32, #tpu.memory_space<vmem>>, vector<1x128xf32>
    %c1_22 = arith.constant 1 : index
    %c0_23 = arith.constant 0 : index
    %23 = vector.load %arg3[%c1_22, %c0_23] : memref<2x128xf32, #tpu.memory_space<vmem>>, vector<1x128xf32>
    %cst_24 = arith.constant 3.000000e+00 : f32
    %24 = vector.broadcast %cst_24 : f32 to vector<1x128xf32>
    %25 = arith.mulf %23, %24 : vector<1x128xf32>
    %26 = math.exp %25 : vector<1x128xf32>
    %27 = vector.broadcast %22 : vector<1x128xf32> to vector<32x128xf32>
    %28 = arith.addf %21, %27 : vector<32x128xf32>
    %29 = vector.broadcast %26 : vector<1x128xf32> to vector<32x128xf32>
    %30 = arith.mulf %28, %29 : vector<32x128xf32>
    %c0_25 = arith.constant 0 : index
    %c0_26 = arith.constant 0 : index
    %31 = vector.load %arg4[%c0_25, %c0_26] : memref<32x128xf32, #tpu.memory_space<vmem>>, vector<32x128xf32>
    tpu.vector_store %arg4[%c0_25, %c0_26], %30 {strides = array<i32>} : memref<32x128xf32, #tpu.memory_space<vmem>>, vector<32x128xf32>,
    return
  }
  func.func @transform_0(%arg0: i32) -> (i32, i32, i32) {
    %c0_i32 = arith.constant 0 : i32
    %c0_i32_0 = arith.constant 0 : i32
    %c0_i32_1 = arith.constant 0 : i32
    %c0_i32_2 = arith.constant 0 : i32
    return %c0_i32, %c0_i32_0, %c0_i32_1 : i32, i32, i32
  }
  func.func @transform_1(%arg0: i32) -> (i32, i32, i32) {
    %c0_i32 = arith.constant 0 : i32
    %c0_i32_0 = arith.constant 0 : i32
    %c0_i32_1 = arith.constant 0 : i32
    %c0_i32_2 = arith.constant 0 : i32
    return %c0_i32, %c0_i32_0, %c0_i32_1 : i32, i32, i32
  }
  func.func @transform_2(%arg0: i32) -> (i32, i32) {
    %c0_i32 = arith.constant 0 : i32
    %c0_i32_0 = arith.constant 0 : i32
    %c0_i32_1 = arith.constant 0 : i32
    return %c0_i32, %c0_i32_0 : i32, i32
  }
  func.func @transform_3(%arg0: i32) -> (i32, i32) {
    %c0_i32 = arith.constant 0 : i32
    %c0_i32_0 = arith.constant 0 : i32
    %c0_i32_1 = arith.constant 0 : i32
    return %c0_i32, %c0_i32_0 : i32, i32
  }
}

</mosaic_0001>

<bundles_post_ra>
// kernel: tile.12
= control target key start
LH: loop header
LB: loop body
LE: loop exit
PB: predicated region body
PF: predicated region fallthrough
CT: control target
= control target key end

     0   :  { %s28_s0 = inlined_call_operand.vmem [shape: f32[8], index: 0, kind: input, shape index: {}]   ;;  %s29_s1 = inlined_call_operand.vmem [shape: f32[16,8], index: 1, kind: output, shape index: {}]  }
   0x1   :  { %v4_v0 = vld [vmem:[%s28_s0] ss:$0 sm:$0xff] }
   0x2   :  { %5 = vst [vmem:[%s29_s1] sm:$0xff] %v4_v0  ;;  %8 = vst [vmem:[%s29_s1 + $0x8] sm:$0xff] %v4_v0 }

// kernel: tile.16
= control target key start
LH: loop header
LB: loop body
LE: loop exit
PB: predicated region body
PF: predicated region fallthrough
CT: control target
= control target key end

     0   :  { %s131_s10 = smov 120   ;;  %s132_s11 = smov 104   ;;  %vm3_vm0 = vcmask 64512   ;;  %vm9_vm1 = vcmask 1048512   ;;  %vm15_vm2 = vcmask 982912   ;;  %vm21_vm3 = vcmask 917312   ;;  %s207_s0 = inlined_call_operand.vmem [shape: f32[16,8], index: 0, kind: input, shape index: {}]   ;;  %s208_s1 = inlined_call_operand.vmem [shape: f32[1,128], index: 1, kind: output, shape index: {}]  }
   0x1   :  { %v101_v0 = vld [vmem:[%s207_s0 + $0xf] sm:$0x1]   ;;  %v103_v1 = vld [vmem:[%s207_s0 + $0xd] sm:$0x1]   ;;  %v102_v2 = vld [vmem:[%s207_s0 + $0xe] sm:$0x1]  }
   0x2   :  { %7 = vrot.lane.b32.xlu0 %v101_v0, %s131_s10  ;;  %19 = vrot.lane.b32.xlu1 %v103_v1, %s132_s11  ;;  %v104_v3 = vld [vmem:[%s207_s0 + $0xc] sm:$0x1]   ;;  %s133_s16 = smov 112   ;;  %s134_s17 = smov 96   ;;  %v105_v4 = vld [vmem:[%s207_s0 + $0xb] sm:$0x1]  }
   0x3   :  { %v106_v5 = vld [vmem:[%s207_s0 + $0xa] sm:$0x1]   ;;  %v2_v6 = vld [vmem:[%s207_s0] sm:$0x1]   ;;  %s135_s24 = smov 88   ;;  %s136_s25 = smov 80  }
   0x4   :  { %4 = vst.msk [vmem:[#allocation0] sm:$0x1] %vm3_vm0, %v2_v6   ;;  %v107_v7 = vld [vmem:[%s207_s0 + $0x9] sm:$0x1]   ;;  %v108_v8 = vld [vmem:[%s207_s0 + $0x8] sm:$0x1]  }
   0x5   :  { %s137_s30 = smov 72   ;;  %s138_s2 = smov 64   ;;  %v109_v9 = vld [vmem:[%s207_s0 + $0x7] sm:$0x1]   ;;  %v110_v10 = vld [vmem:[%s207_s0 + $0x6] sm:$0x1]  }
   0x6   :  { %13 = vrot.lane.b32.xlu0 %v102_v2, %s133_s16  ;;  %25 = vrot.lane.b32.xlu1 %v104_v3, %s134_s17  ;;  %s139_s7 = smov 56   ;;  %s140_s8 = smov 48   ;;  %v111_v11 = vld [vmem:[%s207_s0 + $0x5] sm:$0x1]   ;;  %v112_v12 = vld [vmem:[%s207_s0 + $0x4] sm:$0x1]  }
   0x7   :  { %s141_s13 = smov 40   ;;  %s142_s14 = smov 32   ;;  %v113_v13 = vld [vmem:[%s207_s0 + $0x3] sm:$0x1]   ;;  %v114_v14 = vld [vmem:[%s207_s0 + $0x2] sm:$0x1]  }
   0x8   :  { %s143_s19 = smov 24   ;;  %s144_s20 = smov 16   ;;  %v115_v15 = vld [vmem:[%s207_s0 + $0x1] sm:$0x1]   ;;  %vm27_vm4 = vcmask 851712   ;;  %vm33_vm5 = vcmask 786112  }
   0x9   :  { %s145_s0 = smov 8   ;;  %vm39_vm6 = vcmask 720512   ;;  %vm45_vm7 = vcmask 654912   ;;  %vm51_vm8 = vcmask 589312   ;;  %vm57_vm9 = vcmask 523712  }
   0xa   :  { %31 = vrot.lane.b32.xlu0 %v105_v4, %s135_s24  ;;  %37 = vrot.lane.b32.xlu1 %v106_v5, %s136_s25  ;;  %vm63_vm10 = vcmask 458112   ;;  %vm69_vm11 = vcmask 392512   ;;  %vm75_vm12 = vcmask 326912   ;;  %vm81_vm13 = vcmask 261312  }
   0xb   :  { %vm87_vm14 = vcmask 195712   ;;  %vm93_vm15 = vcmask 130112  }
   0xe   :  { %43 = vrot.lane.b32.xlu0 %v107_v7, %s137_s30  ;;  %49 = vrot.lane.b32.xlu1 %v108_v8, %s138_s2 }
  0x12   :  { %55 = vrot.lane.b32.xlu0 %v109_v9, %s139_s7  ;;  %61 = vrot.lane.b32.xlu1 %v110_v10, %s140_s8 }
  0x16   :  { %67 = vrot.lane.b32.xlu0 %v111_v11, %s141_s13  ;;  %73 = vrot.lane.b32.xlu1 %v112_v12, %s142_s14 }
  0x1a   :  { %79 = vrot.lane.b32.xlu0 %v113_v13, %s143_s19  ;;  %85 = vrot.lane.b32.xlu1 %v114_v14, %s144_s20 }
  0x1e   :  { %91 = vrot.lane.b32.xlu0 %v115_v15, %s145_s0 }
  0x74   :  { %v8_v16 = vpop.permute.xlu0 %7   ;;  %v20_v17 = vpop.permute.xlu1 %19  }
  0x75   :  { %10 = vst.msk [vmem:[#allocation0] sm:$0x1] %vm9_vm1, %v8_v16  }
  0x78   :  { %v14_v18 = vpop.permute.xlu0 %13   ;;  %v26_v19 = vpop.permute.xlu1 %25  }
  0x79   :  { %16 = vst.msk [vmem:[#allocation0] sm:$0x1] %vm15_vm2, %v14_v18  }
  0x7a   :  { %22 = vst.msk [vmem:[#allocation0] sm:$0x1] %vm21_vm3, %v20_v17  }
  0x7b   :  { %28 = vst.msk [vmem:[#allocation0] sm:$0x1] %vm27_vm4, %v26_v19  }
  0x7c   :  { %v32_v20 = vpop.permute.xlu0 %31   ;;  %v38_v21 = vpop.permute.xlu1 %37  }
  0x7d   :  { %34 = vst.msk [vmem:[#allocation0] sm:$0x1] %vm33_vm5, %v32_v20  }
  0x7e   :  { %40 = vst.msk [vmem:[#allocation0] sm:$0x1] %vm39_vm6, %v38_v21  }
  0x80   :  { %v44_v22 = vpop.permute.xlu0 %43   ;;  %v50_v23 = vpop.permute.xlu1 %49  }
  0x81   :  { %46 = vst.msk [vmem:[#allocation0] sm:$0x1] %vm45_vm7, %v44_v22  }
  0x82   :  { %52 = vst.msk [vmem:[#allocation0] sm:$0x1] %vm51_vm8, %v50_v23  }
  0x84   :  { %v56_v24 = vpop.permute.xlu0 %55   ;;  %v62_v25 = vpop.permute.xlu1 %61  }
  0x85   :  { %58 = vst.msk [vmem:[#allocation0] sm:$0x1] %vm57_vm9, %v56_v24  }
  0x86   :  { %64 = vst.msk [vmem:[#allocation0] sm:$0x1] %vm63_vm10, %v62_v25  }
  0x88   :  { %v68_v26 = vpop.permute.xlu0 %67   ;;  %v74_v27 = vpop.permute.xlu1 %73  }
  0x89   :  { %70 = vst.msk [vmem:[#allocation0] sm:$0x1] %vm69_vm11, %v68_v26  }
  0x8a   :  { %76 = vst.msk [vmem:[#allocation0] sm:$0x1] %vm75_vm12, %v74_v27  }
  0x8c   :  { %v80_v28 = vpop.permute.xlu0 %79   ;;  %v86_v29 = vpop.permute.xlu1 %85  }
  0x8d   :  { %82 = vst.msk [vmem:[#allocation0] sm:$0x1] %vm81_vm13, %v80_v28  }
  0x8e   :  { %88 = vst.msk [vmem:[#allocation0] sm:$0x1] %vm87_vm14, %v86_v29  }
  0x90   :  { %v92_v30 = vpop.permute.xlu0 %91  }
  0x91   :  { %94 = vst.msk [vmem:[#allocation0] sm:$0x1] %vm93_vm15, %v92_v30  }
  0x98   :  { %v98_v31 = vld [vmem:[#allocation0] sm:$0x1] }
  0x99   :  { %100 = vst [vmem:[%s208_s1] sm:$0x1] %v98_v31 }

// kernel: zero_conv2d.1
= control target key start
LH: loop header
LB: loop body
LE: loop exit
PB: predicated region body
PF: predicated region fallthrough
CT: control target
= control target key end

     0   :  { %8 = vsyncpa [#allocation4], 0  ;;  %s646_s12 = smov [#allocation3]   ;;  %s749_s0 = inlined_call_operand.vmem [shape: f32[2,16,64], index: 0, kind: input, shape index: {}]   ;;  %s750_s1 = inlined_call_operand.hbm [shape: f32[3,72,128], index: 1, kind: input, shape index: {}]   ;;  %s751_s2 = inlined_call_operand.vmem [shape: f32[2,128], index: 2, kind: input, shape index: {}]   ;;  %s752_s3 = inlined_call_operand.vmem [shape: f32[32,128], index: 3, kind: output, shape index: {}]  }
   0x1   :  { %s16_s13 = sshll.u32 %s646_s12, 4  ;;  %s622_s16 = scalar_lea.hbm %s750_s1, 3456  ;;  %s17_s13 = int_to_ptr.vmem [resolvable:$true] %s16_s13 }
   0x2   :  { %p623_p0 = scmp.ne.s32.totalorder %s750_s1, %s622_s16  ;;  %p626_p1 = scmp.lt.u32.totalorder %s622_s16, %s750_s1 }
   0x4   :  { %p628_p2 = pnand %p626_p1, %p623_p0 }
   0x6   :  { %631 = shalt.err (!%p628_p2)
}
   0x7   :  { %s632_s21 = scalar_lea.vmem %s17_s13, 3456  ;;  %p637_p4 = scmp.lt.s32.totalorder %s17_s13, %s17_s13 }
   0x8   :  { %p633_p3 = scmp.ne.s32.totalorder %s17_s13, %s632_s21  ;;  %p638_p5 = scmp.lt.s32.totalorder %s632_s21, %s632_s21 }
   0xa   :  { %p639_p6 = por %p638_p5, %p637_p4 }
   0xc   :  { %p640_p7 = pnand %p639_p6, %p633_p3 }
   0xe   :  { %643 = shalt.err (!%p640_p7)
}
   0xf   :  { %s647_s22 = smov 128   ;;  %s648_s23 = smov 8  }
  0x10   :  { %22 = dma.hbm_to_vmem [thread:$0]  %s750_s1, 3456, %s17_s13, [#allocation4], %s647_s22, %s647_s22, %s648_s23  }
  0x11   :  { %644 = dma.done.wait [#allocation4], 3456  }
  0x12   :  { %645 = vsyncadd [#allocation4], 4294963840  ;;  %vm28_vm0 = vcmask 588800   ;;  %v649_v0 = vmov 1.0   ;;  %v81_v1 = vld [vmem:[#allocation3 + $0x48] sm:$0xff]  ;;  %v82_v2 = vld [vmem:[#allocation3 + $0x50] sm:$0xff] }
  0x13   :  { %30 = vst.msk [vmem:[#allocation2 + $0x8] sm:$0xff] %vm28_vm0, %v649_v0  ;;  %29 = vst.msk [vmem:[#allocation2] sm:$0xff] %vm28_vm0, %v649_v0  ;;  %v71_v3 = vld [vmem:[#allocation3] sm:$0xff]  ;;  %v550_v4 = vpack.c.bf16 %v82_v2, %v81_v1  ;;  %v72_v5 = vld [vmem:[#allocation3 + $0x8] sm:$0xff]  ;;  %vm41_vm1 = vcmask 523264   ;;  %vm60_vm2 = vcmask 1040384  }
  0x14   :  { %31 = vst.msk [vmem:[#allocation2 + $0x10] sm:$0xff] %vm28_vm0, %v649_v0  ;;  %32 = vst.msk [vmem:[#allocation2 + $0x18] sm:$0xff] %vm28_vm0, %v649_v0  ;;  %v83_v6 = vld [vmem:[#allocation3 + $0x58] sm:$0xff]  ;;  %v84_v7 = vld [vmem:[#allocation3 + $0x60] sm:$0xff]  ;;  %v566_v8 = vpack.c.bf16 %v72_v5, %v71_v3  ;;  %vm278_vm3 = vcmask 1046528  }
  0x15   :  { %33 = vst.msk [vmem:[#allocation2 + $0x20] sm:$0xff] %vm28_vm0, %v649_v0  ;;  %34 = vst.msk [vmem:[#allocation2 + $0x28] sm:$0xff] %vm28_vm0, %v649_v0  ;;  %v554_v9 = vpack.c.bf16 %v84_v7, %v83_v6  ;;  %v73_v10 = vld [vmem:[#allocation3 + $0x10] sm:$0xff]  ;;  %v74_v11 = vld [vmem:[#allocation3 + $0x18] sm:$0xff]  ;;  %551 = vmatprep.subr.bf16.mxu1 %v550_v4 }
  0x16   :  { %35 = vst.msk [vmem:[#allocation2 + $0x30] sm:$0xff] %vm28_vm0, %v649_v0  ;;  %36 = vst.msk [vmem:[#allocation2 + $0x38] sm:$0xff] %vm28_vm0, %v649_v0  ;;  %v85_v12 = vld [vmem:[#allocation3 + $0x68] sm:$0xff]  ;;  %v570_v13 = vpack.c.bf16 %v74_v11, %v73_v10  ;;  %v86_v14 = vld [vmem:[#allocation3 + $0x70] sm:$0xff]  ;;  %567 = vmatprep.subr.bf16.mxu0 %v566_v8  ;;  %553 = vmatpush3.bf16.msra.mxu1 %v550_v4 }
  0x17   :  { %v75_v15 = vld [vmem:[#allocation3 + $0x20] sm:$0xff]  ;;  %v76_v16 = vld [vmem:[#allocation3 + $0x28] sm:$0xff]  ;;  %569 = vmatpush3.bf16.msra.mxu0 %v566_v8  ;;  %555 = vmatprep.subr.bf16.mxu1 %v554_v9  ;;  %v558_v17 = vpack.c.bf16 %v86_v14, %v85_v12  ;;  %v87_v18 = vld [vmem:[#allocation3 + $0x78] sm:$0xff] }
  0x18   :  { %571 = vmatprep.subr.bf16.mxu0 %v570_v13  ;;  %v574_v19 = vpack.c.bf16 %v76_v16, %v75_v15  ;;  %v88_v20 = vld [vmem:[#allocation3 + $0x80] sm:$0xff]  ;;  %v38_v22 = vld [vmem:[%s749_s0 + $0x8] sm:$0xff]  ;;  %v77_v23 = vld [vmem:[#allocation3 + $0x30] sm:$0xff] }
  0x19   :  { %v37_v21 = vld [vmem:[%s749_s0] sm:$0xff]  ;;  %v78_v24 = vld [vmem:[#allocation3 + $0x38] sm:$0xff]  ;;  %43 = vst.msk [vmem:[#allocation2 + $0x10] sm:$0xff] %vm41_vm1, %v38_v22  ;;  %v562_v25 = vpack.c.bf16 %v88_v20, %v87_v18  ;;  %v39_v26 = vld [vmem:[%s749_s0 + $0x10] sm:$0xff] }
  0x1a   :  { %42 = vst.msk [vmem:[#allocation2 + $0x8] sm:$0xff] %vm41_vm1, %v37_v21  ;;  %557 = vmatpush3.bf16.msra.mxu1 %v554_v9  ;;  %v578_v27 = vpack.c.bf16 %v78_v24, %v77_v23  ;;  %v46_v28 = vld [vmem:[#allocation2] sm:$0xff]  ;;  %44 = vst.msk [vmem:[#allocation2 + $0x28] sm:$0xff] %vm41_vm1, %v39_v26  ;;  %v40_v29 = vld [vmem:[%s749_s0 + $0x18] sm:$0xff] }
  0x1b   :  { %573 = vmatpush3.bf16.msra.mxu0 %v570_v13  ;;  %559 = vmatprep.subr.bf16.mxu1 %v558_v17  ;;  %45 = vst.msk [vmem:[#allocation2 + $0x30] sm:$0xff] %vm41_vm1, %v40_v29  ;;  %v61_v30 = vrot.slane %v46_v28, 7  ;;  %v89_v31 = vld [vmem:[#allocation3 + $0x88] sm:$0xff]  ;;  %v79_v34 = vld [vmem:[#allocation3 + $0x40] sm:$0xff]  ;;  %v290_v36 = vld [vmem:[#allocation3 + $0x90] sm:$0xff] }
  0x1c   :  { %575 = vmatprep.subr.bf16.mxu0 %v574_v19  ;;  %v291_v37 = vld [vmem:[#allocation3 + $0x98] sm:$0xff]  ;;  %v50_v39 = vld [vmem:[#allocation2 + $0x20] sm:$0xff]  ;;  %v293_v42 = vld [vmem:[#allocation3 + $0xa8] sm:$0xff] }
  0x1d   :  { %v292_v41 = vld [vmem:[#allocation3 + $0xa0] sm:$0xff]  ;;  %v582_v44 = vpack.c.bf16 %v291_v37, %v290_v36  ;;  %v66_v47 = vrot.slane %v50_v39, 7  ;;  %v294_v51 = vld [vmem:[#allocation3 + $0xb0] sm:$0xff]  ;;  %v295_v52 = vld [vmem:[#allocation3 + $0xb8] sm:$0xff] }
  0x1e   :  { %561 = vmatpush3.bf16.msra.mxu1 %v558_v17  ;;  %v586_v49 = vpack.c.bf16 %v293_v42, %v292_v41  ;;  %v590_v58 = vpack.c.bf16 %v295_v52, %v294_v51  ;;  %v296_v60 = vld [vmem:[#allocation3 + $0xc0] sm:$0xff]  ;;  %v297_v61 = vld [vmem:[#allocation3 + $0xc8] sm:$0xff]  ;;  %v53_v1 = vld [vmem:[#allocation2 + $0x38] sm:$0xff] }
  0x1f   :  { %577 = vmatpush3.bf16.msra.mxu0 %v574_v19  ;;  %563 = vmatprep.subr.bf16.mxu1 %v562_v25  ;;  %v594_v0 = vpack.c.bf16 %v297_v61, %v296_v60  ;;  %v49_v2 = vld [vmem:[#allocation2 + $0x18] sm:$0xff]  ;;  %v298_v3 = vld [vmem:[#allocation3 + $0xd0] sm:$0xff]  ;;  %v287_v4 = vrot.slane %v53_v1, 1  ;;  %v397_v8 = vld [vmem:[%s751_s2 + $0x1] sm:$0x1]  ;;  %v409_v19 = vlaneseq }
  0x20   :  { %579 = vmatprep.subr.bf16.mxu0 %v578_v27  ;;  %v706_v33 = vld [vmem:[#allocation2 + $0x10] sm:$0xff]  ;;  %v282_v5 = vrot.slane %v49_v2, 1  ;;  %v398_v9 = vmul.f32 3.0, %v397_v8  ;;  %v438_v23 = vld [vmem:[%s751_s2] ss:$0 sm:$0xff] }
  0x21   :  { %v47_v32 = vld [vmem:[#allocation2 + $0x8] sm:$0xff]  ;;  %v64_v38 = vrot.slane %v706_v33, 7  ;;  %v280_v54 = vrot.slane %v706_v33, 1  ;;  %v410_v20 = vshrl.u32 %v409_v19, 7 }
  0x22   :  { %v62_v35 = vrot.slane %v47_v32, 7  ;;  %496 = vmatprep.mubr.msk.f32.mxu1 %vm28_vm0, %v47_v32  ;;  %565 = vmatpush3.bf16.msra.mxu1 %v562_v25  ;;  %v51_v43 = vld [vmem:[#allocation2 + $0x28] sm:$0xff]  ;;  %v52_v45 = vld [vmem:[#allocation2 + $0x30] sm:$0xff]  ;;  %v279_v53 = vrot.slane %v47_v32, 1  ;;  %v399_v12 = vmul.f32 1.442695, %v398_v9 }
  0x23   :  { %581 = vmatpush3.bf16.msra.mxu0 %v578_v27  ;;  %494 = vmatprep.subr.mxu1 %v89_v31  ;;  %v67_v46 = vrot.slane %v51_v43, 7  ;;  %v69_v50 = vrot.slane %v52_v45, 7  ;;  %v284_v55 = vrot.slane %v51_v43, 1  ;;  %v285_v57 = vrot.slane %v52_v45, 1 }
  0x24   :  { %v63_v40 = vsel %vm60_vm2, %v61_v30, %v62_v35  ;;  %518 = vmatprep.subr.mxu0 %v79_v34  ;;  %v65_v48 = vsel %vm60_vm2, %v62_v35, %v64_v38  ;;  %v281_v62 = vsel %vm278_vm3, %v279_v53, %v280_v54  ;;  %v283_v7 = vsel %vm278_vm3, %v280_v54, %v282_v5 }
  0x25   :  { %520 = vmatprep.mubr.msk.f32.mxu0 %vm28_vm0, %v63_v40  ;;  %v68_v56 = vsel %vm60_vm2, %v66_v47, %v67_v46  ;;  %v70_v59 = vsel %vm60_vm2, %v67_v46, %v69_v50  ;;  %v286_v63 = vsel %vm278_vm3, %v284_v55, %v285_v57  ;;  %v288_v6 = vsel %vm278_vm3, %v285_v57, %v287_v4 }
  0x26   :  { %495 = vmatpush3.msra.mxu1 %v89_v31  ;;  %620 = vpow2.f32 %v399_v12  ;;  %v411_v21 = vsub.s32 0, %v410_v20 }
  0x27   :  { %519 = vmatpush3.msra.mxu0 %v79_v34  ;;  %497 = vmatmul.mubr.msk.f32.vlgmr.msra.gmra.mrb[0].mxu1 %vm28_vm0, %v706_v33 }
  0x28   :  { %583 = vmatprep.subr.bf16.mxu0 %v582_v44  ;;  %598 = vmatprep.subr.bf16.mxu1 %v582_v44 }
  0x29   :  { %521 = vmatmul.mubr.msk.f32.vlgmr.msra.gmra.mrb[0].mxu0 %vm28_vm0, %v65_v48  ;;  %603 = vmatpush3.bf16.msra.mxu1 %v582_v44 }
  0x2a   :  { %585 = vmatpush3.bf16.msra.mxu0 %v582_v44  ;;  %599 = vmatprep.subr.bf16.mxu1 %v586_v49 }
  0x2b   :  { %587 = vmatprep.subr.bf16.mxu0 %v586_v49  ;;  %499 = vmatprep.mubr.msk.f32.mxu1 %vm28_vm0, %v51_v43 }
  0x2c   :  { %523 = vmatprep.mubr.msk.f32.mxu0 %vm28_vm0, %v68_v56  ;;  %500 = vmatmul.mubr.msk.f32.gmra.mrb[2].mxu1 %vm28_vm0, %v52_v45 }
  0x2d   :  { %604 = vmatpush3.bf16.msra.mxu1 %v586_v49  ;;  %524 = vmatmul.mubr.msk.f32.gmra.mrb[2].mxu0 %vm28_vm0, %v70_v59 }
  0x2e   :  { %589 = vmatpush3.bf16.msra.mxu0 %v586_v49  ;;  %600 = vmatprep.subr.bf16.mxu1 %v590_v58 }
  0x2f   :  { %591 = vmatprep.subr.bf16.mxu0 %v590_v58  ;;  %544 = vmatprep.mubr.msk.f32.mxu0 %vm28_vm0, %v281_v62 }
  0x30   :  { %547 = vmatprep.mubr.msk.f32.mxu1 %vm28_vm0, %v286_v63  ;;  %v621_v22 = vpop.eup %620 }
  0x31   :  { %605 = vmatpush3.bf16.msra.mxu1 %v590_v58  ;;  %v412_v26 = vrot.slane %v621_v22, %v411_v21 }
  0x32   :  { %593 = vmatpush3.bf16.msra.mxu0 %v590_v58  ;;  %601 = vmatprep.subr.bf16.mxu1 %v594_v0 }
  0x33   :  { %595 = vmatprep.subr.bf16.mxu0 %v594_v0 }
  0x35   :  { %606 = vmatpush3.bf16.msra.mxu1 %v594_v0 }
  0x36   :  { %597 = vmatpush3.bf16.msra.mxu0 %v594_v0  ;;  %602 = vmatprep.subr.mxu1 %v298_v3 }
  0x37   :  { %542 = vmatprep.subr.mxu0 %v298_v3 }
  0x39   :  { %607 = vmatpush3.msra.mxu1 %v298_v3 }
  0x3a   :  { %543 = vmatpush3.msra.mxu0 %v298_v3  ;;  %548 = vmatmul.mubr.msk.f32.vlgmr.msra.gmra.mrb[4].mxu1 %vm28_vm0, %v288_v6 }
  0x3b   :  { %545 = vmatmul.mubr.msk.f32.vlgmr.msra.gmra.mrb[0].mxu0 %vm28_vm0, %v283_v7 }
  0xfa   :  { %v498_v10 = vpop.f32.mrb[0].mxu1 }
  0xfb   :  { %v164_v11 = vpop.f32.mrb[1].mxu1 }
  0xff   :  { %v501_v13 = vpop.f32.mrb[2].mxu1 }
 0x100   :  { %v525_v14 = vpop.f32.mrb[2].mxu0  ;;  %v174_v15 = vpop.f32.mrb[3].mxu1 }
 0x101   :  { %v273_v16 = vadd.f32 %v525_v14, %v501_v13  ;;  %v267_v17 = vpop.f32.mrb[3].mxu0 }
 0x102   :  { %v268_v18 = vadd.f32 %v267_v17, %v174_v15 }
 0x10d   :  { %v549_v24 = vpop.f32.mrb[4].mxu1 }
 0x10e   :  { %v546_v25 = vpop.f32.mrb[0].mxu0  ;;  %v395_v27 = vadd.f32 %v549_v24, %v273_v16  ;;  %v383_v28 = vpop.f32.mrb[5].mxu1 }
 0x10f   :  { %v608_v29 = vadd.f32 %v546_v25, %v498_v10  ;;  %v373_v30 = vpop.f32.mrb[1].mxu0  ;;  %v394_v31 = vadd.f32 %v383_v28, %v268_v18 }
 0x110   :  { %v408_v32 = vadd.f32 %v438_v23, %v395_v27  ;;  %v609_v33 = vadd.f32 %v373_v30, %v164_v11 }
 0x111   :  { %v406_v34 = vadd.f32 %v608_v29, %v438_v23  ;;  %v407_v35 = vadd.f32 %v438_v23, %v394_v31 }
 0x112   :  { %v416_v36 = vmul.f32 %v412_v26, %v408_v32  ;;  %v405_v37 = vadd.f32 %v609_v33, %v438_v23 }
 0x113   :  { %v414_v38 = vmul.f32 %v412_v26, %v406_v34  ;;  %v415_v39 = vmul.f32 %v412_v26, %v407_v35 }
 0x114   :  { %420 = vst [vmem:[%s752_s3 + $0x18] sm:$0xff] %v416_v36  ;;  %v413_v40 = vmul.f32 %v412_v26, %v405_v37 }
 0x115   :  { %418 = vst [vmem:[%s752_s3 + $0x8] sm:$0xff] %v414_v38  ;;  %419 = vst [vmem:[%s752_s3 + $0x10] sm:$0xff] %v415_v39 }
 0x116   :  { %417 = vst [vmem:[%s752_s3] sm:$0xff] %v413_v40 }
 0x117   :  { %425 = vsyncpa [#allocation4], 1 }

</bundles_post_ra>
